<compile_context>
chip_gen: v6e
topology: v6e:2x2x1
jax: 0.10.0
libtpu: 0.0.40
codegen_flags: <defaults>
</compile_context>

<pallas_src>
import jax
import jax.numpy as jnp
from jax import lax
from jax.experimental import pallas as pl
from jax.experimental.pallas import tpu as pltpu


def _clip_embedding_kernel(tok_ref, emb_hbm, pos_ref, out_ref, gather_buf, sem):
    # tok_ref:    (B*S,) int32 in SMEM (scalar prefetch), pre-clamped ids
    # emb_hbm:    (V, D) raw HBM ref (manual DMA gather)
    # pos_ref:    (tile_s, D) VMEM tile of the positional embedding
    # out_ref:    (tile_s, D) VMEM output tile (batch dim squeezed)
    # gather_buf: (tile_s, D) VMEM scratch for the gathered rows
    # sem:        single shared DMA semaphore (aggregated wait)
    st = pl.program_id(0)
    b = pl.program_id(1)
    tile_s = gather_buf.shape[0]
    # Tokens are flattened (B, S) row-major with S = num_s_tiles * tile_s.
    row0 = (b * pl.num_programs(0) + st) * tile_s

    # Issue every row gather before waiting so all tile_s DMAs are in flight.
    # Partially unrolled so the LLO scheduler can co-issue scalar address math
    # with descriptor pushes (misc slot).
    def issue_one(i, carry):
        tok = tok_ref[row0 + i]
        pltpu.make_async_copy(
            emb_hbm.at[pl.ds(tok, 1), :],
            gather_buf.at[pl.ds(i, 1), :],
            sem,
        ).start()
        return carry

    lax.fori_loop(0, tile_s, issue_one, 0, unroll=min(tile_s, 8))

    # Single aggregated wait: every row copy signals the same semaphore, so
    # one descriptor covering the whole gather_buf (tile_s * D elements)
    # drains it in one scalar-slot wait instead of tile_s waits.
    pltpu.make_async_copy(
        emb_hbm.at[pl.ds(0, tile_s), :],   # shape-only (byte count)
        gather_buf,
        sem,
    ).wait()

    out_ref[...] = (gather_buf[...] + pos_ref[...]).astype(out_ref.dtype)


def _pick_tile_s(seq_len: int, batch: int) -> int:
    """Largest multiple-of-8 divisor of S up to 512; prefer >= 2 seq tiles
    when batch == 1 so a v7x chip (2 TensorCores) always has work to split."""
    cap = min(seq_len, 512)
    divisors = [t for t in range(8, cap + 1, 8) if seq_len % t == 0]
    if not divisors:
        return seq_len  # full-S block (legal: block dim == full array dim)
    if batch == 1:
        halves = [t for t in divisors if seq_len // t >= 2]
        if halves:
            return max(halves)
    return max(divisors)


def clip_embedding(tokens, emb_table, pos_emb):
    """tokens: (B, S) int; emb_table: (V, D); pos_emb: (S, D)."""
    B, S = tokens.shape
    V, D = emb_table.shape
    assert pos_emb.shape == (S, D)

    tile_s = _pick_tile_s(S, B)
    num_s_tiles = S // tile_s
    assert num_s_tiles * tile_s == S
    # Aggregated-wait descriptor borrows tile_s rows of the table for its
    # byte count; any realistic vocab satisfies this.
    assert V >= tile_s, "vocab_size must be >= tile_s"

    # PyTorch nn.Embedding would raise on out-of-range ids; clamp here instead
    # (vectorized XLA op, effectively free) and keep the kernel issue loop to
    # just "SMEM load -> start descriptor".
    # NOTE: (B*S,) int32 lives in SMEM; for very large B*S (~100K+ tokens)
    # the ids should be chunked per grid step instead.
    tok_flat = jnp.clip(tokens.astype(jnp.int32), 0, V - 1).reshape(B * S)

    grid_spec = pltpu.PrefetchScalarGridSpec(
        num_scalar_prefetch=1,
        # B is the inner axis: the positional tile's block index (st, 0) is
        # constant across it, so the pos tile stays VMEM-resident for the
        # whole batch.
        grid=(num_s_tiles, B),
        in_specs=[
            # Token embedding table: stays in HBM, gathered row-by-row.
            pl.BlockSpec(memory_space=pl.ANY),
            # Positional embedding: one (tile_s, D) VMEM tile per seq tile.
            pl.BlockSpec((tile_s, D), lambda st, b, tok: (st, 0)),
        ],
        # Batch dim squeezed; lane-dense (tile_s, D) output slab.
        out_specs=pl.BlockSpec((None, tile_s, D), lambda st, b, tok: (b, st, 0)),
        scratch_shapes=[
            pltpu.VMEM((tile_s, D), emb_table.dtype),
            pltpu.SemaphoreType.DMA,
        ],
    )

    return pl.pallas_call(
        _clip_embedding_kernel,
        out_shape=jax.ShapeDtypeStruct((B, S, D), emb_table.dtype),
        grid_spec=grid_spec,
        compiler_params=pltpu.CompilerParams(
            dimension_semantics=("parallel", "parallel")),
    )(tok_flat, emb_table, pos_emb)


if __name__ == "__main__":
    # Small synthetic configuration consistent with CLIPEmbedding(__init__).
    vocab_size = 64
    embedding_dim = 32
    sequence_length = 8
    batch = 2

    key = jax.random.PRNGKey(0)
    k_tok, k_emb, k_pos = jax.random.split(key, 3)

    # PyTorch zero-inits the positional embedding; use random values so the
    # add is actually exercised.
    emb_table = jax.random.normal(k_emb, (vocab_size, embedding_dim),
                                  dtype=jnp.float32)
    pos_emb = 0.01 * jax.random.normal(k_pos, (sequence_length, embedding_dim),
                                       dtype=jnp.float32)
    tokens = jax.random.randint(k_tok, (batch, sequence_length),
                                0, vocab_size, dtype=jnp.int32)

    out = clip_embedding(tokens, emb_table, pos_emb)
    out = jax.block_until_ready(out)

    # Pure-JAX reference: embedding lookup + broadcasted positional add.
    ref = jnp.take(emb_table, tokens, axis=0) + pos_emb[None, :, :]

    assert out.shape == (batch, sequence_length, embedding_dim)
    assert out.dtype == jnp.float32
    assert jnp.allclose(out, ref, atol=1e-5, rtol=1e-5)

    print("KERNEL_OK")
</pallas_src>

<mosaic_0001>
module attributes {stable_mosaic.version = 11 : i64} {
  func.func @_clip_embedding_kernel(%arg0: i32, %arg1: i32, %arg2: memref<16xi32, #tpu.memory_space<smem>>, %arg3: memref<64x32xf32, #tpu.memory_space<any>>, %arg4: memref<8x32xf32, #tpu.memory_space<vmem>>, %arg5: memref<1x8x32xf32, #tpu.memory_space<vmem>>, %arg6: memref<8x32xf32, #tpu.memory_space<vmem>>, %arg7: memref<!tpu.dma_semaphore, #tpu.memory_space<semaphore_mem>>) attributes {dimension_semantics = [#tpu.dimension_semantics<parallel>, #tpu.dimension_semantics<parallel>], iteration_bounds = array<i64: 1, 2>, scalar_prefetch = 1 : i64, scratch_operands = 2 : i64, tpu.core_type = #tpu.core_type<tc>, window_params = [{}, {transform_indices = @transform_1, window_bounds = array<i64: 8, 32>}, {transform_indices = @transform_2, window_bounds = array<i64: 1, 8, 32>}]} {
    %c1_i32 = arith.constant 1 : i32
    %0 = arith.muli %arg1, %c1_i32 : i32
    %1 = arith.addi %0, %arg0 : i32
    %c8_i32 = arith.constant 8 : i32
    %2 = arith.muli %1, %c8_i32 : i32
    %c0_i32 = arith.constant 0 : i32
    %3 = arith.addi %2, %c0_i32 : i32
    %4 = arith.index_cast %3 : i32 to index
    %5 = memref.load %arg2[%4] : memref<16xi32, #tpu.memory_space<smem>>
    %c0_i32_0 = arith.constant 0 : i32
    %6 = tpu.memref_slice %arg3[%5, %c0_i32_0] : memref<64x32xf32, #tpu.memory_space<any>> -> memref<1x32xf32, #tpu.memory_space<any>>
    %c0_i32_1 = arith.constant 0 : i32
    %7 = tpu.memref_slice %arg6[%c0_i32, %c0_i32_1] : memref<8x32xf32, #tpu.memory_space<vmem>> -> memref<1x32xf32, #tpu.memory_space<vmem>>
    tpu.enqueue_dma source(%6 : memref<1x32xf32, #tpu.memory_space<any>>) target(%7 : memref<1x32xf32, #tpu.memory_space<vmem>>) target_semaphore(%arg7 : memref<!tpu.dma_semaphore, #tpu.memory_space<semaphore_mem>>)
    %c1_i32_2 = arith.constant 1 : i32
    %8 = arith.addi %2, %c1_i32_2 : i32
    %9 = arith.index_cast %8 : i32 to index
    %10 = memref.load %arg2[%9] : memref<16xi32, #tpu.memory_space<smem>>
    %c0_i32_3 = arith.constant 0 : i32
    %11 = tpu.memref_slice %arg3[%10, %c0_i32_3] : memref<64x32xf32, #tpu.memory_space<any>> -> memref<1x32xf32, #tpu.memory_space<any>>
    %c0_i32_4 = arith.constant 0 : i32
    %12 = tpu.memref_slice %arg6[%c1_i32_2, %c0_i32_4] : memref<8x32xf32, #tpu.memory_space<vmem>> -> memref<1x32xf32, #tpu.memory_space<vmem>>
    tpu.enqueue_dma source(%11 : memref<1x32xf32, #tpu.memory_space<any>>) target(%12 : memref<1x32xf32, #tpu.memory_space<vmem>>) target_semaphore(%arg7 : memref<!tpu.dma_semaphore, #tpu.memory_space<semaphore_mem>>)
    %c2_i32 = arith.constant 2 : i32
    %13 = arith.addi %2, %c2_i32 : i32
    %14 = arith.index_cast %13 : i32 to index
    %15 = memref.load %arg2[%14] : memref<16xi32, #tpu.memory_space<smem>>
    %c0_i32_5 = arith.constant 0 : i32
    %16 = tpu.memref_slice %arg3[%15, %c0_i32_5] : memref<64x32xf32, #tpu.memory_space<any>> -> memref<1x32xf32, #tpu.memory_space<any>>
    %c0_i32_6 = arith.constant 0 : i32
    %17 = tpu.memref_slice %arg6[%c2_i32, %c0_i32_6] : memref<8x32xf32, #tpu.memory_space<vmem>> -> memref<1x32xf32, #tpu.memory_space<vmem>>
    tpu.enqueue_dma source(%16 : memref<1x32xf32, #tpu.memory_space<any>>) target(%17 : memref<1x32xf32, #tpu.memory_space<vmem>>) target_semaphore(%arg7 : memref<!tpu.dma_semaphore, #tpu.memory_space<semaphore_mem>>)
    %c3_i32 = arith.constant 3 : i32
    %18 = arith.addi %2, %c3_i32 : i32
    %19 = arith.index_cast %18 : i32 to index
    %20 = memref.load %arg2[%19] : memref<16xi32, #tpu.memory_space<smem>>
    %c0_i32_7 = arith.constant 0 : i32
    %21 = tpu.memref_slice %arg3[%20, %c0_i32_7] : memref<64x32xf32, #tpu.memory_space<any>> -> memref<1x32xf32, #tpu.memory_space<any>>
    %c0_i32_8 = arith.constant 0 : i32
    %22 = tpu.memref_slice %arg6[%c3_i32, %c0_i32_8] : memref<8x32xf32, #tpu.memory_space<vmem>> -> memref<1x32xf32, #tpu.memory_space<vmem>>
    tpu.enqueue_dma source(%21 : memref<1x32xf32, #tpu.memory_space<any>>) target(%22 : memref<1x32xf32, #tpu.memory_space<vmem>>) target_semaphore(%arg7 : memref<!tpu.dma_semaphore, #tpu.memory_space<semaphore_mem>>)
    %c4_i32 = arith.constant 4 : i32
    %23 = arith.addi %2, %c4_i32 : i32
    %24 = arith.index_cast %23 : i32 to index
    %25 = memref.load %arg2[%24] : memref<16xi32, #tpu.memory_space<smem>>
    %c0_i32_9 = arith.constant 0 : i32
    %26 = tpu.memref_slice %arg3[%25, %c0_i32_9] : memref<64x32xf32, #tpu.memory_space<any>> -> memref<1x32xf32, #tpu.memory_space<any>>
    %c0_i32_10 = arith.constant 0 : i32
    %27 = tpu.memref_slice %arg6[%c4_i32, %c0_i32_10] : memref<8x32xf32, #tpu.memory_space<vmem>> -> memref<1x32xf32, #tpu.memory_space<vmem>>
    tpu.enqueue_dma source(%26 : memref<1x32xf32, #tpu.memory_space<any>>) target(%27 : memref<1x32xf32, #tpu.memory_space<vmem>>) target_semaphore(%arg7 : memref<!tpu.dma_semaphore, #tpu.memory_space<semaphore_mem>>)
    %c5_i32 = arith.constant 5 : i32
    %28 = arith.addi %2, %c5_i32 : i32
    %29 = arith.index_cast %28 : i32 to index
    %30 = memref.load %arg2[%29] : memref<16xi32, #tpu.memory_space<smem>>
    %c0_i32_11 = arith.constant 0 : i32
    %31 = tpu.memref_slice %arg3[%30, %c0_i32_11] : memref<64x32xf32, #tpu.memory_space<any>> -> memref<1x32xf32, #tpu.memory_space<any>>
    %c0_i32_12 = arith.constant 0 : i32
    %32 = tpu.memref_slice %arg6[%c5_i32, %c0_i32_12] : memref<8x32xf32, #tpu.memory_space<vmem>> -> memref<1x32xf32, #tpu.memory_space<vmem>>
    tpu.enqueue_dma source(%31 : memref<1x32xf32, #tpu.memory_space<any>>) target(%32 : memref<1x32xf32, #tpu.memory_space<vmem>>) target_semaphore(%arg7 : memref<!tpu.dma_semaphore, #tpu.memory_space<semaphore_mem>>)
    %c6_i32 = arith.constant 6 : i32
    %33 = arith.addi %2, %c6_i32 : i32
    %34 = arith.index_cast %33 : i32 to index
    %35 = memref.load %arg2[%34] : memref<16xi32, #tpu.memory_space<smem>>
    %c0_i32_13 = arith.constant 0 : i32
    %36 = tpu.memref_slice %arg3[%35, %c0_i32_13] : memref<64x32xf32, #tpu.memory_space<any>> -> memref<1x32xf32, #tpu.memory_space<any>>
    %c0_i32_14 = arith.constant 0 : i32
    %37 = tpu.memref_slice %arg6[%c6_i32, %c0_i32_14] : memref<8x32xf32, #tpu.memory_space<vmem>> -> memref<1x32xf32, #tpu.memory_space<vmem>>
    tpu.enqueue_dma source(%36 : memref<1x32xf32, #tpu.memory_space<any>>) target(%37 : memref<1x32xf32, #tpu.memory_space<vmem>>) target_semaphore(%arg7 : memref<!tpu.dma_semaphore, #tpu.memory_space<semaphore_mem>>)
    %c7_i32 = arith.constant 7 : i32
    %38 = arith.addi %2, %c7_i32 : i32
    %39 = arith.index_cast %38 : i32 to index
    %40 = memref.load %arg2[%39] : memref<16xi32, #tpu.memory_space<smem>>
    %c0_i32_15 = arith.constant 0 : i32
    %41 = tpu.memref_slice %arg3[%40, %c0_i32_15] : memref<64x32xf32, #tpu.memory_space<any>> -> memref<1x32xf32, #tpu.memory_space<any>>
    %c0_i32_16 = arith.constant 0 : i32
    %42 = tpu.memref_slice %arg6[%c7_i32, %c0_i32_16] : memref<8x32xf32, #tpu.memory_space<vmem>> -> memref<1x32xf32, #tpu.memory_space<vmem>>
    tpu.enqueue_dma source(%41 : memref<1x32xf32, #tpu.memory_space<any>>) target(%42 : memref<1x32xf32, #tpu.memory_space<vmem>>) target_semaphore(%arg7 : memref<!tpu.dma_semaphore, #tpu.memory_space<semaphore_mem>>)
    %c8_i32_17 = arith.constant 8 : i32
    %c0_i32_18 = arith.constant 0 : i32
    %c0_i32_19 = arith.constant 0 : i32
    %43 = tpu.memref_slice %arg3[%c0_i32_18, %c0_i32_19] : memref<64x32xf32, #tpu.memory_space<any>> -> memref<8x32xf32, #tpu.memory_space<any>>
    tpu.wait_dma2 semaphore(%arg7 : memref<!tpu.dma_semaphore, #tpu.memory_space<semaphore_mem>>) src(%43 : memref<8x32xf32, #tpu.memory_space<any>>) dst(%arg6 : memref<8x32xf32, #tpu.memory_space<vmem>>)
    %c0 = arith.constant 0 : index
    %c0_20 = arith.constant 0 : index
    %44 = vector.load %arg6[%c0, %c0_20] : memref<8x32xf32, #tpu.memory_space<vmem>>, vector<8x32xf32>
    %c0_21 = arith.constant 0 : index
    %c0_22 = arith.constant 0 : index
    %45 = vector.load %arg4[%c0_21, %c0_22] : memref<8x32xf32, #tpu.memory_space<vmem>>, vector<8x32xf32>
    %46 = arith.addf %44, %45 : vector<8x32xf32>
    %c0_23 = arith.constant 0 : index
    %c0_24 = arith.constant 0 : index
    %c0_25 = arith.constant 0 : index
    %47 = vector.load %arg5[%c0_23, %c0_24, %c0_25] : memref<1x8x32xf32, #tpu.memory_space<vmem>>, vector<1x8x32xf32>
    %48 = vector.shape_cast %47 : vector<1x8x32xf32> to vector<8x32xf32>
    %49 = vector.shape_cast %46 : vector<8x32xf32> to vector<1x8x32xf32>
    tpu.vector_store %arg5[%c0_23, %c0_24, %c0_25], %49 {strides = array<i32>} : memref<1x8x32xf32, #tpu.memory_space<vmem>>, vector<1x8x32xf32>,
    return
  }
  func.func @transform_1(%arg0: i32, %arg1: i32, %arg2: memref<16xi32, #tpu.memory_space<smem>>) -> (i32, i32) {
    %c0_i32 = arith.constant 0 : i32
    %c0_i32_0 = arith.constant 0 : i32
    return %arg0, %c0_i32 : i32, i32
  }
  func.func @transform_2(%arg0: i32, %arg1: i32, %arg2: memref<16xi32, #tpu.memory_space<smem>>) -> (i32, i32, i32) {
    %c0_i32 = arith.constant 0 : i32
    %c0_i32_0 = arith.constant 0 : i32
    return %arg1, %arg0, %c0_i32 : i32, i32, i32
  }
}

</mosaic_0001>

<bundles_post_ra>
// kernel: tpu_custom_call.1
= control target key start
LH: loop header
LB: loop body
LE: loop exit
PB: predicated region body
PF: predicated region fallthrough
CT: control target
= control target key end

     0   :  { %s1059_s0 = inlined_call_operand.vmem [shape: s32[16], index: 0, kind: input, shape index: {}]   ;;  %s1060_s1 = inlined_call_operand.vmem [shape: f32[64,32], index: 1, kind: input, shape index: {}]   ;;  %s1061_s2 = inlined_call_operand.vmem [shape: f32[8,32], index: 2, kind: input, shape index: {}]   ;;  %s1062_s3 = inlined_call_operand.hbm [shape: f32[2,8,32], index: 3, kind: output, shape index: {}]  }
   0x1   :  { %s8_s14 = sshll.u32 %s1059_s0, 4  ;;  %s9_s14 = int_to_ptr.vmem [resolvable:$true] %s8_s14 }
   0x2   :  { %s797_s15 = scalar_lea.vmem %s9_s14, 16  ;;  %p802_p1 = scmp.lt.s32.totalorder %s9_s14, %s9_s14 }
   0x3   :  { %p798_p0 = scmp.ne.s32.totalorder %s9_s14, %s797_s15  ;;  %p803_p2 = scmp.lt.s32.totalorder %s797_s15, %s797_s15 }
   0x5   :  { %p804_p3 = por %p803_p2, %p802_p1 }
   0x7   :  { %p805_p4 = pnand %p804_p3, %p798_p0 }
   0x9   :  { %808 = shalt.err (!%p805_p4)  }
   0xa   :  { %s891_s16 = smov [#allocation5]  }
   0xb   :  { %11 = dma.vmem_to_smem %s9_s14, 16, %s891_s16, [#allocation4] }
   0xc   :  { %859 = dma.done.wait [#allocation4], 16 }
   0xd   :  { %860 = vsyncadd [#allocation4], 4294967280 }
   0xe   :  { %13 = sfence }
   0xf   :  { %14 = vsyncpa [#allocation7], 0 }
  0x10   :  { %16 = vsyncpa [#allocation7 + $0x1], 0  ;;  %s916_s17 = smov 0   ;;  %s918_s18 = smov 0  }
  0x11   :  { %s920_s0 = smov 0   ;;  %s922_s19 = smov 0  }
  0x12   :  { %s924_s20 = smov 0   ;;  %s926_s21 = smov 0  }
  0x13 LB: > { %s729_s22 = sadd.s32 4294967295, %s889_s21   ;;  %s730_s23 = sadd.s32 4294967294, %s889_s21   ;;  %s889_s21 = sphi %s926_s21, %s22_s21   ;;  %s885_s20 = sphi %s924_s20, %s1069_s20   ;;  %s881_s19 = sphi %s922_s19, %s1068_s19   ;;  %s877_s0 = sphi %s920_s0, %s1067_s0   ;;  %s873_s18 = sphi %s918_s18, %s1066_s18   ;;  %s869_s17 = sphi %s916_s17, %s1065_s17  }
  0x14   : > { %s31_s24 = sadd.s32 1, %s885_s20  ;;  %s69_s25 = sadd.s32 1, %s877_s0 }
  0x15   : > { %p32_p5 = scmp.ge.s32.totalorder %s31_s24, 2  ;;  %p79_p6 = scmp.ne.s32.totalorder %s877_s0, %s873_s18 }
  0x16   : > { %p80_p7 = scmp.eq.s32.totalorder %s729_s22, 1  ;;  %p85_p8 = scmp.ne.s32.totalorder %s873_s18, %s869_s17 }
  0x17   : > { %s1071_s24 = smov (%p32_p5, %s31_s24), 0  ;;  %p86_p10 = scmp.eq.s32.totalorder %s730_s23, 1 }
  0x18   : > { %p956_p9 = por %p80_p7, %p79_p6  ;;  %s64_s27 = ssub.s32 %s885_s20, %s1071_s24 }
  0x19   : > { %p733_p11 = scmp.ge.s32.totalorder %s889_s21, 1  ;;  %p67_p12 = scmp.eq.s32.totalorder %s64_s27, 0 }
  0x1a   : > { %p963_p13 = por %p86_p10, %p85_p8  ;;  %p111_p0 = scmp.lt.s32.totalorder %s889_s21, 3 }
  0x1b   : > { %s969_s29 = scalar_select %p67_p12, %s877_s0, %s69_s25  }
  0x1c   : > { %p112_p1 = pnand %p733_p11, %p111_p0 }
  0x1d   : > { %s127_s30 = sand.u32 (!%p112_p1), 1, %s873_s18   ;;  %s973_s4 = sshll.u32 (!%p112_p1), %s881_s19, 3 }
  0x1e   : > { %115 = sbr.rel (%p112_p1) target bundleno = 135 (0x87), region = 24  ;;  %s977_s5 = sshll.u32 (!%p112_p1), %s127_s30, 3 }
  0x1f   : > { %s136_s6 = sld [smem:[#allocation5 + %s973_s4]] (!%p112_p1)  ;;  %s129_s10 = scalar_lea.vmem (!%p112_p1), [#allocation6], %s977_s5 }
  0x25   : > { %s137_s9 = scalar_lea.vmem %s1060_s1, %s136_s6 }
  0x26   : > { %v156_v0 = vld [vmem:[%s137_s9] sm:$0x1] }
  0x27   : > { %157 = vst [vmem:[#allocation2] sm:$0x1] %v156_v0 }
  0x28   : > { %183 = vsyncadd [#allocation3], 16  ;;  %s184_s11 = sadd.s32 1, %s973_s4 }
  0x29   : > { %s185_s12 = sld [smem:[#allocation5 + %s184_s11]] }
  0x2f   : > { %s186_s15 = scalar_lea.vmem %s1060_s1, %s185_s12 }
  0x30   : > { %v206_v1 = vld [vmem:[%s186_s15] sm:$0x1] }
  0x31   : > { %207 = vst [vmem:[#allocation2 + $0x1] sm:$0x1] %v206_v1 }
  0x32   : > { %233 = vsyncadd [#allocation3], 16  ;;  %s234_s16 = sadd.s32 2, %s973_s4 }
  0x33   : > { %s235_s22 = sld [smem:[#allocation5 + %s234_s16]] }
  0x39   : > { %s236_s27 = scalar_lea.vmem %s1060_s1, %s235_s22 }
  0x3a   : > { %v256_v2 = vld [vmem:[%s236_s27] sm:$0x1] }
  0x3b   : > { %257 = vst [vmem:[#allocation2 + $0x2] sm:$0x1] %v256_v2 }
  0x3c   : > { %283 = vsyncadd [#allocation3], 16  ;;  %s284_s6 = sadd.s32 3, %s973_s4 }
  0x3d   : > { %s285_s7 = sld [smem:[#allocation5 + %s284_s6]] }
  0x43   : > { %s286_s11 = scalar_lea.vmem %s1060_s1, %s285_s7 }
  0x44   : > { %v306_v3 = vld [vmem:[%s286_s11] sm:$0x1] }
  0x45   : > { %307 = vst [vmem:[#allocation2 + $0x3] sm:$0x1] %v306_v3 }
  0x46   : > { %333 = vsyncadd [#allocation3], 16  ;;  %s334_s12 = sadd.s32 4, %s973_s4 }
  0x47   : > { %s335_s13 = sld [smem:[#allocation5 + %s334_s12]] }
  0x4d   : > { %s336_s16 = scalar_lea.vmem %s1060_s1, %s335_s13 }
  0x4e   : > { %v356_v4 = vld [vmem:[%s336_s16] sm:$0x1] }
  0x4f   : > { %357 = vst [vmem:[#allocation2 + $0x4] sm:$0x1] %v356_v4 }
  0x50   : > { %383 = vsyncadd [#allocation3], 16  ;;  %s384_s22 = sadd.s32 5, %s973_s4 }
  0x51   : > { %s385_s23 = sld [smem:[#allocation5 + %s384_s22]] }
  0x57   : > { %s386_s6 = scalar_lea.vmem %s1060_s1, %s385_s23 }
  0x58   : > { %v406_v5 = vld [vmem:[%s386_s6] sm:$0x1] }
  0x59   : > { %407 = vst [vmem:[#allocation2 + $0x5] sm:$0x1] %v406_v5 }
  0x5a   : > { %433 = vsyncadd [#allocation3], 16  ;;  %s434_s7 = sadd.s32 6, %s973_s4 }
  0x5b   : > { %s435_s8 = sld [smem:[#allocation5 + %s434_s7]] }
  0x61   : > { %s436_s12 = scalar_lea.vmem %s1060_s1, %s435_s8 }
  0x62   : > { %v456_v6 = vld [vmem:[%s436_s12] sm:$0x1] }
  0x63   : > { %457 = vst [vmem:[#allocation2 + $0x6] sm:$0x1] %v456_v6 }
  0x64   : > { %483 = vsyncadd [#allocation3], 16  ;;  %s484_s13 = sadd.s32 7, %s973_s4 }
  0x65   : > { %s485_s14 = sld [smem:[#allocation5 + %s484_s13]] }
  0x6b   : > { %s486_s22 = scalar_lea.vmem %s1060_s1, %s485_s14 }
  0x6c   : > { %v506_v7 = vld [vmem:[%s486_s22] sm:$0x1] }
  0x6d   : > { %507 = vst [vmem:[#allocation2 + $0x7] sm:$0x1] %v506_v7 }
  0x6e   : > { %533 = vsyncadd [#allocation3], 16 }
  0x6f   : > { %861 = dma.done.wait [#allocation3], 128 }
  0x70   : > { %862 = vsyncadd [#allocation3], 4294967168  ;;  %s737_s23 = sshll.u32 %s881_s19, 7  ;;  %s557_s25 = sshll.u32 %s129_s10, 4  ;;  %v538_v9 = vld [vmem:[%s1061_s2] sm:$0xff]  ;;  %vm540_vm0 = vcmask 261120   ;;  %s558_s25 = int_to_ptr.vmem [resolvable:$true] %s557_s25 }
  0x71   : > { %s555_s8 = scalar_lea.hbm %s1062_s3, %s737_s23  ;;  %s543_s9 = scalar_lea.sflag [#allocation7], %s127_s30 }
  0x72   : > { %s809_s11 = scalar_lea.vmem %s558_s25, 128  ;;  %s892_s19 = smov [#allocation6]  }
  0x73   : > { %p810_p2 = scmp.ne.s32.totalorder %s558_s25, %s809_s11  ;;  %s813_s12 = sshll.u32 %s892_s19, 4  ;;  %s814_s12 = int_to_ptr.vmem [resolvable:$false] %s813_s12 }
  0x74   : > { %v537_v8 = vld [vmem:[#allocation2] sm:$0xff]  ;;  %s815_s13 = scalar_lea.vmem %s814_s12, 256  ;;  %p816_p5 = scmp.lt.s32.totalorder %s558_s25, %s814_s12 }
  0x75   : > { %v539_v10 = vadd.f32 %v538_v9, %v537_v8  ;;  %p811_p3 = pnand %p810_p2, %p956_p9  ;;  %p817_p6 = scmp.lt.s32.totalorder %s815_s13, %s809_s11 }
  0x77   : > { %541 = vst.msk [vmem:[%s129_s10] sm:$0xff] %vm540_vm0, %v539_v10  ;;  %p812_p4 = pneg %p811_p3  ;;  %p818_p7 = por %p817_p6, %p816_p5 }
  0x79   : > { %p819_p8 = pnand %p818_p7, %p812_p4 }
  0x7b   : > { %822 = shalt.err (!%p819_p8)
}
  0x7c   : > { %s823_s14 = scalar_lea.hbm %s555_s8, 128  ;;  %s827_s10 = scalar_lea.hbm %s1062_s3, 256 }
  0x7d   : > { %p824_p10 = scmp.ne.s32.totalorder %s555_s8, %s823_s14  ;;  %p828_p0 = scmp.lt.s32.totalorder %s555_s8, %s1062_s3 }
  0x7e   : > { %p829_p1 = scmp.lt.s32.totalorder %s827_s10, %s823_s14 }
  0x7f   : > { %p825_p11 = pnand %p824_p10, %p956_p9 }
  0x80   : > { %p830_p2 = por %p829_p1, %p828_p0 }
  0x81   : > { %p826_p12 = pneg %p825_p11 }
  0x83   : > { %p831_p3 = pnand %p830_p2, %p826_p12 }
  0x85   : > { %834 = shalt.err (!%p831_p3)
}
  0x86   : > { %741 = dma.vmem_to_hbm [thread:$0]  (%p956_p9), %s558_s25, 128, %s555_s8, %s543_s9  }
  0x87 PF: > { %p747_p4 = scmp.ge.s32.totalorder %s889_s21, 2  ;;  %s569_s22 = sand.u32 1, %s869_s17  }
  0x88   : > { %s570_s23 = scalar_lea.sflag [#allocation7], %s569_s22 }
  0x89   : > { %p744_p5 = pnand %p747_p4, %p963_p13 }
  0x8b   : > { %p745_p6 = pneg %p744_p5 }
  0x8d   : > { %864 = dma.done.wait (%p745_p6), %s570_s23, 128  }
  0x8e   : > { %866 = vsyncadd (%p745_p6), %s570_s23, 4294967168  ;;  %s22_s21 = sadd.s32 1, %s889_s21   ;;  %s1065_s17 = smov %s873_s18 }
  0x8f   : > { %p19_p7 = scmp.ge.s32.totalorder %s22_s21, 4   ;;  %s1066_s18 = smov %s877_s0 }
  0x90   : > { %s1067_s0 = smov %s969_s29  ;;  %s1068_s19 = smov %s885_s20 }
  0x91   : > { %s1069_s20 = smov %s1071_s24  ;;  %21 = sbr.rel (!%p19_p7) target bundleno = 19 (0x13), region = 394 }
  0x96   :  { %575 = vsyncpa [#allocation7], 1 }
  0x97   :  { %577 = vsyncpa [#allocation7 + $0x1], 1 }
  0x98   :  { %578 = vsyncmov [#allocation3] }
  0x9b   :  { %s579_s26 = vpop.sfrf %578 }
  0x9c   :  { %p740_p9 = scmp.ne.s32.totalorder %s579_s26, 0 }
  0x9e   :  { %583 = shalt.err (%p740_p9)  }

</bundles_post_ra>
